<compile_context>
chip_gen: v5e
topology: v5e:2x2
jax: 0.10.0
libtpu: 0.0.40
codegen_flags: <defaults>
</compile_context>

<pallas_src>
import functools

import jax
import jax.numpy as jnp
from jax import lax
from jax.experimental import pallas as pl
from jax.experimental.pallas import tpu as pltpu

_BF16 = jnp.bfloat16
_F32 = jnp.float32


def _round_up(x, m):
    return (x + m - 1) // m * m


def _cross_attention_kernel(heads, c_pad, sc_valid,
                            x_ref, kv_ref,
                            wq_ref, bq_ref,
                            wo_ref, bo_ref,
                            o_ref):
    """One (batch-block, q-tile) per grid step.

    Fuses: Q projection + per-head (masked) softmax attention + accumulated
    output projection. K/V arrive pre-projected (computed once per batch
    element in the wrapper), so no K/V GEMMs are repeated per q-tile.
    """
    bb, tq, cp = x_ref.shape
    _, sc_pad, _ = kv_ref.shape
    hcp = heads * c_pad

    # Q projection: bf16 MXU operands, f32 accumulation + f32 bias; cast to
    # bf16 once, immediately (no big f32 temporaries carried into the loop).
    x2 = x_ref[...].astype(_BF16).reshape(bb * tq, cp)
    q = jnp.dot(x2, wq_ref[...], preferred_element_type=_F32) + bq_ref[...]
    q = q.reshape(bb, tq, hcp).astype(_BF16)

    kv = kv_ref[...]                                     # (bb, sc_pad, 2*hcp) bf16

    # Additive mask for the zero-padded key positions (Sc padded to 128-dense).
    if sc_pad > sc_valid:
        key_pos = lax.broadcasted_iota(jnp.int32, (1, 1, sc_pad), 2)
        score_bias = jnp.where(key_pos < sc_valid, 0.0, -1e30).astype(_F32)
    else:
        score_bias = None

    out = jnp.zeros((bb * tq, c_pad), _F32)

    # `heads` is a static Python int -> unrolled. Per-head slices are 128-lane
    # aligned (c_pad % 128 == 0) so no relayout; output projection accumulated
    # per head (no concatenate).
    for h in range(heads):
        qh = q[:, :, h * c_pad:(h + 1) * c_pad]                    # bf16
        kh = kv[:, :, h * c_pad:(h + 1) * c_pad]                   # bf16
        vh = kv[:, :, hcp + h * c_pad:hcp + (h + 1) * c_pad]       # bf16

        # scores = Q K^T (NO 1/sqrt(d) scaling -- matches the reference).
        # Contract last dims directly; no explicit transpose.
        scores = lax.dot_general(
            qh, kh, (((2,), (2,)), ((0,), (0,))),
            preferred_element_type=_F32)                           # (bb, tq, sc) f32
        if score_bias is not None:
            scores = scores + score_bias

        # Softmax in f32 (portable; v5e has no bf16 VPU/EUP).
        # TODO(synk): on v6e/v7x the exp / normalize could run in bf16 to
        # relieve the EUP slot at small head dims; kept f32 for exact parity.
        m = jnp.max(scores, axis=-1, keepdims=True)
        p = jnp.exp(scores - m)
        denom = jnp.sum(p, axis=-1, keepdims=True)
        inv_denom = pl.reciprocal(denom, approx=True)              # EUP slot

        if sc_pad > c_pad:
            # Normalize the smaller tensor: scale att after P@V.
            att = lax.dot_general(
                p.astype(_BF16), vh, (((2,), (1,)), ((0,), (0,))),
                preferred_element_type=_F32)                       # (bb, tq, cp)
            att = att * inv_denom
        else:
            probs = (p * inv_denom).astype(_BF16)
            att = lax.dot_general(
                probs, vh, (((2,), (1,)), ((0,), (0,))),
                preferred_element_type=_F32)                       # (bb, tq, cp)

        wo_h = wo_ref[h * c_pad:(h + 1) * c_pad, :]                # (cp, cp) bf16
        out = out + jnp.dot(att.reshape(bb * tq, c_pad).astype(_BF16), wo_h,
                            preferred_element_type=_F32)

    out = out + bo_ref[...]
    o_ref[...] = out.reshape(bb, tq, c_pad).astype(o_ref.dtype)


def _derive_tiles(B, Sx, sc_pad, c_pad, hc_pad, block_b, block_q):
    """Pick (block_b, block_q) that fit the per-chip VMEM budget and expose at
    least two grid steps on the 'parallel' axes (v7x has 2 TensorCores)."""
    try:
        vmem_cap = int(pltpu.get_tpu_info().vmem_capacity_bytes)
    except Exception:
        vmem_cap = 64 * 1024 * 1024          # conservative: v7x per-TC VMEM

    def vmem_estimate(bb, bq):
        bf, f4 = 2, 4
        x_tile = bb * bq * c_pad * bf
        kv_tile = bb * sc_pad * 2 * hc_pad * bf
        o_tile = bb * bq * c_pad * f4
        weights = 2 * c_pad * hc_pad * bf + (hc_pad + c_pad) * f4
        pipelined = 2 * (x_tile + kv_tile + o_tile + weights)   # double-buffered
        temps = (bb * bq * hc_pad * bf                 # q (bf16)
                 + 2 * bb * bq * sc_pad * f4           # scores + probs (f32)
                 + 2 * bb * bq * c_pad * f4)           # att + out accumulator
        return pipelined + temps

    if block_b is None:
        block_b = max(1, min(B, 8))
    if block_q is None:
        block_q = min(512, _round_up(Sx, 8))   # big tiles amortize grid-step cost
    budget = int(vmem_cap * 0.7)
    while vmem_estimate(block_b, block_q) > budget and (block_q > 8 or block_b > 1):
        if block_q > 8:
            block_q = max(8, _round_up(block_q // 2, 8))
        else:
            block_b = max(1, block_b // 2)

    def n_steps(bb, bq):
        return (_round_up(B, bb) // bb) * (_round_up(Sx, bq) // bq)

    if n_steps(block_b, block_q) < 2:          # keep v7x's second core busy
        sx8 = _round_up(Sx, 8)
        if sx8 // 8 >= 2:
            block_q = max(8, _round_up(sx8 // 2, 8))
        elif block_b > 1:
            block_b = max(1, block_b // 2)

    return block_b, block_q, vmem_estimate(block_b, block_q), vmem_cap


def cross_attention(x, context, params, heads, *, block_b=None, block_q=None):
    """x: (B, Sx, C), context: (B, Sc, C) -> (B, Sx, C) (x.dtype preserved)."""
    B, Sx, C = x.shape
    Bc, Sc, Cc = context.shape
    assert B == Bc and C == Cc

    c_pad = _round_up(C, 128)          # lane-dense channels (unmasked stores)
    hc_pad = heads * c_pad
    sc_pad = _round_up(Sc, 128)        # lane-dense scores / full-cadence P@V
    # TODO(synk): for C << 128 on v5e the blanket channel padding quadruples
    # HBM + MXU work; a native-C path (pad only weights, pad in-VMEM) would be
    # cheaper there.

    block_b, block_q, vmem_est, vmem_cap = _derive_tiles(
        B, Sx, sc_pad, c_pad, hc_pad, block_b, block_q)
    b_pad = _round_up(B, block_b)
    sx_pad = _round_up(Sx, block_q)

    def pad_in_proj(w, b):
        # torch Linear weight (H*C, C) -> x @ W layout (c_pad, heads*c_pad);
        # each head's output block zero-padded to c_pad (biases padded with 0).
        wt = w.T.reshape(C, heads, C)
        wt = jnp.pad(wt, ((0, c_pad - C), (0, 0), (0, c_pad - C)))
        bt = jnp.pad(b.reshape(heads, C), ((0, 0), (0, c_pad - C)))
        return (wt.reshape(c_pad, hc_pad).astype(_BF16),
                bt.reshape(1, hc_pad).astype(_F32))

    wq, bq = pad_in_proj(params["wq"], params["bq"])
    wk, bk = pad_in_proj(params["wk"], params["bk"])
    wv, bv = pad_in_proj(params["wv"], params["bv"])
    # Fused K|V weight: one (c_pad, 2*hc_pad) GEMM fills a 256-wide MXU.
    w_kv = jnp.concatenate([wk, wv], axis=1)
    b_kv = jnp.concatenate([bk, bv], axis=1)

    # output Linear weight (C, H*C) -> (heads*c_pad, c_pad)
    wo = params["wo"].T.reshape(heads, C, C)
    wo = jnp.pad(wo, ((0, 0), (0, c_pad - C), (0, c_pad - C)))
    wo = wo.reshape(hc_pad, c_pad).astype(_BF16)
    bo = jnp.pad(params["bo"], (0, c_pad - C)).reshape(1, c_pad).astype(_F32)

    def prep(a, tgt):
        pads = tuple((0, t - s) for s, t in zip(a.shape, tgt))
        if any(p for _, p in pads):
            return jnp.pad(a, pads).astype(_BF16)   # fused pad+cast: one HBM pass
        return a                                    # already aligned: cast in-kernel

    x_p = prep(x, (b_pad, sx_pad, c_pad))
    ctx_p = jnp.pad(
        context,
        ((0, b_pad - B), (0, sc_pad - Sc), (0, c_pad - C))).astype(_BF16)

    # K/V projection: computed ONCE per batch element (plain XLA GEMM, bf16
    # operands / f32 accumulation), instead of once per q-tile in the kernel.
    kv = jnp.dot(ctx_p.reshape(b_pad * sc_pad, c_pad), w_kv,
                 preferred_element_type=_F32) + b_kv
    kv_p = kv.reshape(b_pad, sc_pad, 2 * hc_pad).astype(_BF16)

    kernel = functools.partial(_cross_attention_kernel, heads, c_pad, Sc)

    grid = (b_pad // block_b, sx_pad // block_q)

    # NOTE: weight/bias index maps are grid-invariant; with
    # pl.BlockSpec(..., pipeline_mode=pl.Buffered(1)) they could be
    # single-buffered to halve resident weight VMEM (relevant on v7x).
    grid_spec = pltpu.PrefetchScalarGridSpec(
        num_scalar_prefetch=0,
        grid=grid,
        in_specs=[
            pl.BlockSpec((block_b, block_q, c_pad), lambda b, qi: (b, qi, 0)),    # x
            pl.BlockSpec((block_b, sc_pad, 2 * hc_pad), lambda b, qi: (b, 0, 0)), # KV
            pl.BlockSpec((c_pad, hc_pad), lambda b, qi: (0, 0)),                  # Wq
            pl.BlockSpec((1, hc_pad), lambda b, qi: (0, 0)),                      # bq
            pl.BlockSpec((hc_pad, c_pad), lambda b, qi: (0, 0)),                  # Wo
            pl.BlockSpec((1, c_pad), lambda b, qi: (0, 0)),                       # bo
        ],
        out_specs=pl.BlockSpec((block_b, block_q, c_pad), lambda b, qi: (b, qi, 0)),
    )

    bf, f4 = 2, 4
    cost = pl.CostEstimate(
        flops=(2 * b_pad * sx_pad * c_pad * hc_pad                 # Q projection
               + 4 * b_pad * heads * sx_pad * sc_pad * c_pad       # QK^T + PV
               + 2 * b_pad * sx_pad * hc_pad * c_pad),             # output proj
        transcendentals=b_pad * heads * sx_pad * sc_pad,           # exp
        bytes_accessed=(b_pad * sx_pad * c_pad * bf                # x (bf16)
                        + b_pad * sc_pad * 2 * hc_pad * bf         # KV (bf16)
                        + b_pad * sx_pad * c_pad * f4              # out (f32)
                        + 2 * c_pad * hc_pad * bf + (hc_pad + c_pad) * f4),
    )

    out_p = pl.pallas_call(
        kernel,
        out_shape=jax.ShapeDtypeStruct((b_pad, sx_pad, c_pad), x.dtype),
        grid_spec=grid_spec,
        compiler_params=pltpu.CompilerParams(
            dimension_semantics=("parallel", "parallel"),
            vmem_limit_bytes=int(min(vmem_cap,
                                     max(32 * 1024 * 1024, int(vmem_est * 1.25)))),
        ),
        cost_estimate=cost,
    )(x_p, kv_p, wq, bq, wo, bo)

    if (b_pad, sx_pad, c_pad) == (B, Sx, C):
        return out_p
    return out_p[:B, :Sx, :C]


def cross_attention_reference(x, context, params, heads):
    """Pure-JAX f32 replica of the PyTorch forward (valid for heads == 1)."""
    B, Sx, C = x.shape
    hp = lax.Precision.HIGHEST
    q = jnp.dot(x, params["wq"].T, precision=hp) + params["bq"]
    k = jnp.dot(context, params["wk"].T, precision=hp) + params["bk"]
    v = jnp.dot(context, params["wv"].T, precision=hp) + params["bv"]
    q = q.reshape(B, -1, heads, C).transpose(0, 2, 1, 3)
    k = k.reshape(B, -1, heads, C).transpose(0, 2, 1, 3)
    v = v.reshape(B, -1, heads, C).transpose(0, 2, 1, 3)
    scores = jnp.einsum("ijkl,ijml->ijkm", q, k, precision=hp)
    probs = jax.nn.softmax(scores, axis=-1)
    att = jnp.einsum("ijkl,ijlm->ijkm", probs, v, precision=hp)
    att = att.transpose(0, 2, 1, 3).reshape(B, -1, C)      # (B, Sx*heads, C)
    return jnp.dot(att, params["wo"].T, precision=hp) + params["bo"]


def cross_attention_reference_bf16(x, context, params, heads):
    """Pure-JAX reference using the kernel's precision (bf16 MXU operands, f32 accum)."""
    bf, f32 = jnp.bfloat16, jnp.float32
    B, Sx, C = x.shape

    def mm(a, b):
        return jnp.dot(a.astype(bf), b.astype(bf), preferred_element_type=f32)

    q = mm(x, params["wq"].T) + params["bq"]
    k = mm(context, params["wk"].T) + params["bk"]
    v = mm(context, params["wv"].T) + params["bv"]

    out = jnp.zeros((B, Sx, C), f32)
    for h in range(heads):
        sl = slice(h * C, (h + 1) * C)
        qh, kh, vh = q[..., sl].astype(bf), k[..., sl].astype(bf), v[..., sl].astype(bf)
        s = jnp.einsum("bqc,bkc->bqk", qh, kh, preferred_element_type=f32)
        p = jax.nn.softmax(s, axis=-1)
        att = jnp.einsum("bqk,bkc->bqc", p.astype(bf), vh, preferred_element_type=f32)
        out = out + mm(att, params["wo"].T[sl, :])
    return out + params["bo"]


def init_params(key, in_channels, heads):
    """Deterministic nn.Linear-style init (uniform +-1/sqrt(fan_in))."""
    C, HC = in_channels, in_channels * heads
    ks = jax.random.split(key, 8)

    def lin(kw, kb, fan_in, fan_out):
        bound = 1.0 / jnp.sqrt(jnp.float32(fan_in))
        w = jax.random.uniform(kw, (fan_out, fan_in), jnp.float32, -bound, bound)
        b = jax.random.uniform(kb, (fan_out,), jnp.float32, -bound, bound)
        return w, b

    wq, bq = lin(ks[0], ks[1], C, HC)
    wk, bk = lin(ks[2], ks[3], C, HC)
    wv, bv = lin(ks[4], ks[5], C, HC)
    wo, bo = lin(ks[6], ks[7], HC, C)
    return dict(wq=wq, bq=bq, wk=wk, bk=bk, wv=wv, bv=bv, wo=wo, bo=bo)


if __name__ == "__main__":
    B, Sx, Sc, C = 2, 16, 8, 32
    heads = 1   # reference module only shape-checks for heads == 1 (see note above)

    root = jax.random.PRNGKey(0)
    k_params, k_x, k_ctx = jax.random.split(root, 3)
    params = init_params(k_params, C, heads)
    x = jax.random.normal(k_x, (B, Sx, C), jnp.float32)
    context = jax.random.normal(k_ctx, (B, Sc, C), jnp.float32)

    fn = jax.jit(cross_attention, static_argnums=(3,))
    out = jax.block_until_ready(fn(x, context, params, heads))
    assert out.shape == (B, Sx, C), out.shape

    # Tight structural check against a precision-matched (bf16-operand) reference.
    ref_bf16 = jax.block_until_ready(
        cross_attention_reference_bf16(x, context, params, heads))
    assert jnp.allclose(out, ref_bf16, atol=1e-2, rtol=1e-2), \
        float(jnp.max(jnp.abs(out - ref_bf16)))

    # Semantic check against the exact f32 PyTorch-equivalent forward
    # (tolerance sized for bf16 MXU operands with f32 accumulation).
    ref_f32 = jax.block_until_ready(
        cross_attention_reference(x, context, params, heads))
    assert jnp.allclose(out, ref_f32, atol=5e-2, rtol=5e-2), \
        float(jnp.max(jnp.abs(out - ref_f32)))

    print("KERNEL_OK")
</pallas_src>

<mosaic_0001>
module attributes {stable_mosaic.version = 11 : i64} {
  func.func @_cross_attention_kernel(%arg0: i32, %arg1: i32, %arg2: memref<2x8x128xbf16, #tpu.memory_space<vmem>>, %arg3: memref<2x128x256xbf16, #tpu.memory_space<vmem>>, %arg4: memref<128x128xbf16, #tpu.memory_space<vmem>>, %arg5: memref<1x128xf32, #tpu.memory_space<vmem>>, %arg6: memref<128x128xbf16, #tpu.memory_space<vmem>>, %arg7: memref<1x128xf32, #tpu.memory_space<vmem>>, %arg8: memref<2x8x128xf32, #tpu.memory_space<vmem>>) attributes {dimension_semantics = [#tpu.dimension_semantics<parallel>, #tpu.dimension_semantics<parallel>], iteration_bounds = array<i64: 1, 2>, scalar_prefetch = 0 : i64, scratch_operands = 0 : i64, tpu.core_type = #tpu.core_type<tc>, window_params = [{transform_indices = @transform_0, window_bounds = array<i64: 2, 8, 128>}, {transform_indices = @transform_1, window_bounds = array<i64: 2, 128, 256>}, {pipeline_mode = #tpu.pipeline_mode<synchronous>, transform_indices = @transform_2, window_bounds = array<i64: 128, 128>}, {pipeline_mode = #tpu.pipeline_mode<synchronous>, transform_indices = @transform_3, window_bounds = array<i64: 1, 128>}, {pipeline_mode = #tpu.pipeline_mode<synchronous>, transform_indices = @transform_4, window_bounds = array<i64: 128, 128>}, {pipeline_mode = #tpu.pipeline_mode<synchronous>, transform_indices = @transform_5, window_bounds = array<i64: 1, 128>}, {transform_indices = @transform_6, window_bounds = array<i64: 2, 8, 128>}]} {
    %c0 = arith.constant 0 : index
    %c0_0 = arith.constant 0 : index
    %c0_1 = arith.constant 0 : index
    %0 = vector.load %arg2[%c0, %c0_0, %c0_1] : memref<2x8x128xbf16, #tpu.memory_space<vmem>>, vector<2x8x128xbf16>
    %1 = vector.shape_cast %0 : vector<2x8x128xbf16> to vector<16x128xbf16>
    %c0_2 = arith.constant 0 : index
    %c0_3 = arith.constant 0 : index
    %2 = vector.load %arg4[%c0_2, %c0_3] : memref<128x128xbf16, #tpu.memory_space<vmem>>, vector<128x128xbf16>
    %cst = arith.constant dense<0.000000e+00> : vector<16x128xf32>
    %3 = tpu.matmul %1, %2, %cst {dimension_numbers = #tpu.dot_dimension_numbers<[1], [0], [0], [1], [0, 0, 1, 1], [], []>} : vector<16x128xbf16>, vector<128x128xbf16>, vector<16x128xf32> -> vector<16x128xf32>
    %c0_4 = arith.constant 0 : index
    %c0_5 = arith.constant 0 : index
    %4 = vector.load %arg5[%c0_4, %c0_5] : memref<1x128xf32, #tpu.memory_space<vmem>>, vector<1x128xf32>
    %5 = vector.broadcast %4 : vector<1x128xf32> to vector<16x128xf32>
    %6 = arith.addf %3, %5 : vector<16x128xf32>
    %7 = vector.shape_cast %6 : vector<16x128xf32> to vector<2x8x128xf32>
    %8 = arith.truncf %7 : vector<2x8x128xf32> to vector<2x8x128xbf16>
    %c0_6 = arith.constant 0 : index
    %c0_7 = arith.constant 0 : index
    %c0_8 = arith.constant 0 : index
    %9 = vector.load %arg3[%c0_6, %c0_7, %c0_8] : memref<2x128x256xbf16, #tpu.memory_space<vmem>>, vector<2x128x256xbf16>
    %10 = tpu.iota {dimensions = array<i32: 2>} : vector<1x1x128xi32>
    %c8_i32 = arith.constant 8 : i32
    %11 = vector.broadcast %c8_i32 : i32 to vector<1x1x128xi32>
    %12 = arith.cmpi slt, %10, %11 : vector<1x1x128xi32>
    %cst_9 = arith.constant 0.000000e+00 : f32
    %cst_10 = arith.constant -1.000000e+30 : f32
    %13 = vector.broadcast %cst_9 : f32 to vector<1x1x128xf32>
    %14 = vector.broadcast %cst_10 : f32 to vector<1x1x128xf32>
    %15 = arith.select %12, %13, %14 : vector<1x1x128xi1>, vector<1x1x128xf32>
    %cst_11 = arith.constant 0.000000e+00 : f32
    %16 = vector.broadcast %cst_11 : f32 to vector<16x128xf32>
    %17 = vector.extract_strided_slice %9 {offsets = [0, 0, 0], sizes = [2, 128, 128], strides = [1, 1, 1]} : vector<2x128x256xbf16> to vector<2x128x128xbf16>
    %18 = vector.extract_strided_slice %9 {offsets = [0, 0, 128], sizes = [2, 128, 128], strides = [1, 1, 1]} : vector<2x128x256xbf16> to vector<2x128x128xbf16>
    %cst_12 = arith.constant dense<0.000000e+00> : vector<2x8x128xf32>
    %19 = tpu.matmul %8, %17, %cst_12 {dimension_numbers = #tpu.dot_dimension_numbers<[2], [2], [1], [1], [0, 0, 0, 1, 1, 1], [0], [0]>} : vector<2x8x128xbf16>, vector<2x128x128xbf16>, vector<2x8x128xf32> -> vector<2x8x128xf32>
    %20 = vector.broadcast %15 : vector<1x1x128xf32> to vector<2x8x128xf32>
    %21 = arith.addf %19, %20 : vector<2x8x128xf32>
    %cst_13 = arith.constant dense<0xFF800000> : vector<2x8xf32>
    %22 = vector.multi_reduction <maximumf>, %21, %cst_13 [2] : vector<2x8x128xf32> to vector<2x8xf32>
    %23 = vector.shape_cast %22 : vector<2x8xf32> to vector<2x8x1xf32>
    %24 = vector.broadcast %23 : vector<2x8x1xf32> to vector<2x8x128xf32>
    %25 = arith.subf %21, %24 : vector<2x8x128xf32>
    %26 = math.exp %25 : vector<2x8x128xf32>
    %cst_14 = arith.constant dense<0.000000e+00> : vector<2x8xf32>
    %27 = vector.multi_reduction <add>, %26, %cst_14 [2] : vector<2x8x128xf32> to vector<2x8xf32>
    %28 = vector.shape_cast %27 : vector<2x8xf32> to vector<2x8x1xf32>
    %29 = tpu.reciprocal %28 {approx = true} : vector<2x8x1xf32> -> vector<2x8x1xf32>
    %30 = vector.broadcast %29 : vector<2x8x1xf32> to vector<2x8x128xf32>
    %31 = arith.mulf %26, %30 : vector<2x8x128xf32>
    %32 = arith.truncf %31 : vector<2x8x128xf32> to vector<2x8x128xbf16>
    %cst_15 = arith.constant dense<0.000000e+00> : vector<2x8x128xf32>
    %33 = tpu.matmul %32, %18, %cst_15 {dimension_numbers = #tpu.dot_dimension_numbers<[2], [1], [1], [2], [0, 0, 0, 1, 1, 2], [0], [0]>} : vector<2x8x128xbf16>, vector<2x128x128xbf16>, vector<2x8x128xf32> -> vector<2x8x128xf32>
    %c0_16 = arith.constant 0 : index
    %c0_17 = arith.constant 0 : index
    %34 = vector.load %arg6[%c0_16, %c0_17] : memref<128x128xbf16, #tpu.memory_space<vmem>>, vector<128x128xbf16>
    %35 = vector.shape_cast %33 : vector<2x8x128xf32> to vector<16x128xf32>
    %36 = arith.truncf %35 : vector<16x128xf32> to vector<16x128xbf16>
    %cst_18 = arith.constant dense<0.000000e+00> : vector<16x128xf32>
    %37 = tpu.matmul %36, %34, %cst_18 {dimension_numbers = #tpu.dot_dimension_numbers<[1], [0], [0], [1], [0, 0, 1, 1], [], []>} : vector<16x128xbf16>, vector<128x128xbf16>, vector<16x128xf32> -> vector<16x128xf32>
    %38 = arith.addf %16, %37 : vector<16x128xf32>
    %c0_19 = arith.constant 0 : index
    %c0_20 = arith.constant 0 : index
    %39 = vector.load %arg7[%c0_19, %c0_20] : memref<1x128xf32, #tpu.memory_space<vmem>>, vector<1x128xf32>
    %40 = vector.broadcast %39 : vector<1x128xf32> to vector<16x128xf32>
    %41 = arith.addf %38, %40 : vector<16x128xf32>
    %42 = vector.shape_cast %41 : vector<16x128xf32> to vector<2x8x128xf32>
    %c0_21 = arith.constant 0 : index
    %c0_22 = arith.constant 0 : index
    %c0_23 = arith.constant 0 : index
    %43 = vector.load %arg8[%c0_21, %c0_22, %c0_23] : memref<2x8x128xf32, #tpu.memory_space<vmem>>, vector<2x8x128xf32>
    tpu.vector_store %arg8[%c0_21, %c0_22, %c0_23], %42 {strides = array<i32>} : memref<2x8x128xf32, #tpu.memory_space<vmem>>, vector<2x8x128xf32>,
    return
  }
  func.func @transform_0(%arg0: i32, %arg1: i32) -> (i32, i32, i32) {
    %c0_i32 = arith.constant 0 : i32
    %c0_i32_0 = arith.constant 0 : i32
    return %arg0, %arg1, %c0_i32 : i32, i32, i32
  }
  func.func @transform_1(%arg0: i32, %arg1: i32) -> (i32, i32, i32) {
    %c0_i32 = arith.constant 0 : i32
    %c0_i32_0 = arith.constant 0 : i32
    %c0_i32_1 = arith.constant 0 : i32
    return %arg0, %c0_i32, %c0_i32_0 : i32, i32, i32
  }
  func.func @transform_2(%arg0: i32, %arg1: i32) -> (i32, i32) {
    %c0_i32 = arith.constant 0 : i32
    %c0_i32_0 = arith.constant 0 : i32
    %c0_i32_1 = arith.constant 0 : i32
    return %c0_i32, %c0_i32_0 : i32, i32
  }
  func.func @transform_3(%arg0: i32, %arg1: i32) -> (i32, i32) {
    %c0_i32 = arith.constant 0 : i32
    %c0_i32_0 = arith.constant 0 : i32
    %c0_i32_1 = arith.constant 0 : i32
    return %c0_i32, %c0_i32_0 : i32, i32
  }
  func.func @transform_4(%arg0: i32, %arg1: i32) -> (i32, i32) {
    %c0_i32 = arith.constant 0 : i32
    %c0_i32_0 = arith.constant 0 : i32
    %c0_i32_1 = arith.constant 0 : i32
    return %c0_i32, %c0_i32_0 : i32, i32
  }
  func.func @transform_5(%arg0: i32, %arg1: i32) -> (i32, i32) {
    %c0_i32 = arith.constant 0 : i32
    %c0_i32_0 = arith.constant 0 : i32
    %c0_i32_1 = arith.constant 0 : i32
    return %c0_i32, %c0_i32_0 : i32, i32
  }
  func.func @transform_6(%arg0: i32, %arg1: i32) -> (i32, i32, i32) {
    %c0_i32 = arith.constant 0 : i32
    %c0_i32_0 = arith.constant 0 : i32
    return %arg0, %arg1, %c0_i32 : i32, i32, i32
  }
}

</mosaic_0001>

<bundles_post_ra>
// kernel: cross_attention.1
= control target key start
LH: loop header
LB: loop body
LE: loop exit
PB: predicated region body
PF: predicated region fallthrough
CT: control target
= control target key end

     0   :  { %11 = vsyncpa [#allocation4], 0  ;;  %s1665_s0 = inlined_call_operand.vmem [shape: bf16[2,16,128], index: 0, kind: input, shape index: {}]   ;;  %s1666_s1 = inlined_call_operand.vmem [shape: bf16[2,128,256], index: 1, kind: input, shape index: {}]   ;;  %s1667_s2 = inlined_call_operand.vmem [shape: bf16[128,128], index: 2, kind: input, shape index: {}]   ;;  %s1668_s3 = inlined_call_operand.vmem [shape: f32[1,128], index: 3, kind: input, shape index: {}]   ;;  %s1669_s4 = inlined_call_operand.vmem [shape: bf16[128,128], index: 4, kind: input, shape index: {}]   ;;  %s1670_s5 = inlined_call_operand.vmem [shape: f32[1,128], index: 5, kind: input, shape index: {}]   ;;  %s1671_s6 = inlined_call_operand.hbm [shape: f32[2,16,128], index: 6, kind: output, shape index: {}]  }
   0x1   :  { %13 = vsyncpa [#allocation4 + $0x1], 0  ;;  %s1300_s21 = smov 0   ;;  %s1302_s22 = smov 0  }
   0x2   :  { %s1304_s23 = smov 0   ;;  %s1306_s24 = smov 0  }
   0x3   :  { %s1308_s25 = smov 0   ;;  %s1310_s26 = smov 0  }
   0x4 LB: > { %s933_s27 = sadd.s32 4294967295, %s1259_s26   ;;  %s934_s28 = sadd.s32 4294967294, %s1259_s26   ;;  %s1259_s26 = sphi %s1310_s26, %s19_s26   ;;  %s1255_s25 = sphi %s1308_s25, %s1678_s25   ;;  %s1251_s24 = sphi %s1306_s24, %s1677_s24   ;;  %s1247_s23 = sphi %s1304_s23, %s1676_s23   ;;  %s1243_s22 = sphi %s1302_s22, %s1675_s22   ;;  %s1239_s21 = sphi %s1300_s21, %s1674_s21  }
   0x5   : > { %s28_s29 = sadd.s32 1, %s1255_s25  ;;  %s40_s30 = sadd.s32 1, %s1247_s23 }
   0x6   : > { %p29_p0 = scmp.ge.s32.totalorder %s28_s29, 2  ;;  %p47_p1 = scmp.ne.s32.totalorder %s1247_s23, %s1243_s22 }
   0x7   : > { %p48_p2 = scmp.eq.s32.totalorder %s1259_s26, 0  ;;  %p189_p3 = scmp.eq.s32.totalorder %s933_s27, 1 }
   0x8   : > { %s1680_s29 = smov (%p29_p0, %s28_s29), 0  ;;  %p194_p6 = scmp.ne.s32.totalorder %s1243_s22, %s1239_s21 }
   0x9   : > { %p49_p4 = por %p48_p2, %p47_p1  ;;  %p1339_p5 = por %p189_p3, %p47_p1 }
   0xa   : > { %s36_s8 = ssub.s32 %s1255_s25, %s1680_s29  ;;  %p195_p8 = scmp.eq.s32.totalorder %s934_s28, 1 }
   0xb   : > { %p38_p7 = scmp.eq.s32.totalorder %s36_s8, 0  ;;  %p937_p10 = scmp.ge.s32.totalorder %s1259_s26, 2 }
   0xc   : > { %p1350_p9 = por %p195_p8, %p194_p6 }
   0xd   : > { %s1348_s9 = scalar_select %p38_p7, %s1247_s23, %s40_s30  }
   0xe   : > { %233 = sbr.rel (%p937_p10) target bundleno = 25 (0x19), region = 36 }
  0x13   : > { %236 = sbr.rel (!%p49_p4) target bundleno = 25 (0x19), region = 40  ;;  %s238_s11 = sand.u32 (%p49_p4), 1, %s1247_s23  }
  0x14   : > { %s939_s12 = sshll.u32 (%p49_p4), %s1255_s25, 2  ;;  %s938_s13 = sshll.u32 (%p49_p4), %s238_s11, 3 }
  0x15   : > { %s245_s16 = scalar_lea.vmem (%p49_p4), %s1665_s0, %s939_s12  ;;  %s240_s17 = scalar_lea.vmem (%p49_p4), [#allocation2], %s938_s13 }
  0x16   : > { %v262_v0 = vld [vmem:[%s245_s16] sm:$0xf] (%p49_p4)  ;;  %v264_v1 = vld [vmem:[%s245_s16 + $0x8] sm:$0xf] (%p49_p4) }
  0x17   : > { %263 = vst [vmem:[%s240_s17] sm:$0xf] (%p49_p4), %v262_v0 }
  0x18   : > { %265 = vst [vmem:[%s240_s17 + $0x4] sm:$0xf] %v264_v1 }
  0x19 PF: > { %p940_p11 = scmp.ge.s32.totalorder %s1259_s26, 1  ;;  %p292_p12 = scmp.lt.s32.totalorder %s1259_s26, 3 }
  0x1b   : > { %p293_p13 = pnand %p940_p11, %p292_p12 }
  0x1c   : > { %s1419_s12 = sand.u32 (!%p293_p13), 1, %s1243_s22   ;;  %s1076_s14 = sshll.u32 (!%p293_p13), %s1251_s24, 3 }
  0x1d   : > { %296 = sbr.rel (%p293_p13) target bundleno = 867 (0x363), region = 81  ;;  %s941_s15 = sshll.u32 (!%p293_p13), %s1419_s12, 3 }
  0x1e   : > { %s301_s13 = scalar_lea.vmem (!%p293_p13), [#allocation2], %s941_s15  ;;  %s942_s8 = sshll.u32 (!%p293_p13), %s1419_s12, 4 }
  0x1f   : > { %s834_s18 = scalar_lea.hbm (!%p293_p13), %s1671_s6, %s1076_s14  ;;  %s333_s19 = scalar_lea.vmem (!%p293_p13), [#allocation3], %s942_s8 }
  0x20   : > { %s835_s20 = sshll.u32 (!%p293_p13), %s333_s19, 4  ;;  %s837_s27 = sshll.u32 (!%p293_p13), %s834_s18, 4  ;;  %s836_s20 = int_to_ptr.vmem [resolvable:$true] %s835_s20  ;;  %s838_s27 = int_to_ptr.hbm [resolvable:$true] %s837_s27 }
  0x21   : > { %s821_s28 = scalar_lea.sflag (!%p293_p13), [#allocation4], %s1419_s12  ;;  %s1195_s15 = sshra.s32 (!%p293_p13), %s838_s27, 4  ;;  %s1196_s15 = int_to_ptr.hbm [resolvable:$true] %s1195_s15 }
  0x22   : > { %v1087_v2 = vld [vmem:[%s1667_s2 + $0x38] sm:$0xff]  ;;  %v1086_v3 = vld [vmem:[%s1667_s2 + $0x30] sm:$0xff]  ;;  %v1085_v10 = vld [vmem:[%s1667_s2 + $0x28] sm:$0xff]  ;;  %s1197_s24 = scalar_lea.hbm %s1196_s15, 16  ;;  %s1201_s8 = scalar_lea.hbm %s1671_s6, 32 }
  0x23   : > { %419 = vmatpush.bf16.msra.mxu0 %v1087_v2  ;;  %v1009_v4 = vld [vmem:[%s1666_s1 + $0x70] sm:$0xf]  ;;  %v1095_v5 = vld [vmem:[%s1666_s1 + $0x74] sm:$0xf0]  ;;  %v1005_v11 = vld [vmem:[%s1666_s1 + $0x60] sm:$0xf]  ;;  %v467_v2 = vlaneseq  ;;  %p1198_p0 = scmp.ne.s32.totalorder %s1196_s15, %s1197_s24  ;;  %p1202_p3 = scmp.lt.s32.totalorder %s1196_s15, %s1671_s6 }
  0x24   : > { %v1010_v6 = vor.u32 %v1095_v5, %v1009_v4  ;;  %v1041_v7 = vld [vmem:[%s1666_s1 + $0xf0] sm:$0xf]  ;;  %v1103_v8 = vld [vmem:[%s1666_s1 + $0xf4] sm:$0xf0]  ;;  %v1094_v12 = vld [vmem:[%s1666_s1 + $0x64] sm:$0xf0]  ;;  %p1203_p4 = scmp.lt.s32.totalorder %s1201_s8, %s1197_s24 }
  0x25   : > { %v1042_v9 = vor.u32 %v1103_v8, %v1041_v7  ;;  %v1037_v13 = vld [vmem:[%s1666_s1 + $0xe0] sm:$0xf]  ;;  %v1102_v14 = vld [vmem:[%s1666_s1 + $0xe4] sm:$0xf0]  ;;  %v1006_v16 = vor.u32 %v1094_v12, %v1005_v11  ;;  %v1083_v18 = vld [vmem:[%s1667_s2 + $0x18] sm:$0xff]  ;;  %p1199_p1 = pnand %p1198_p0, %p1339_p5 }
  0x26   : > { %519 = vmatpush.bf16.xpose.msra.mxu1 %v1010_v6  ;;  %v1084_v15 = vld [vmem:[%s1667_s2 + $0x20] sm:$0xff]  ;;  %v1038_v17 = vor.u32 %v1102_v14, %v1037_v13  ;;  %v1001_v19 = vld [vmem:[%s1666_s1 + $0x50] sm:$0xf]  ;;  %v1093_v20 = vld [vmem:[%s1666_s1 + $0x54] sm:$0xf0]  ;;  %p1204_p6 = por %p1203_p4, %p1202_p3 }
  0x27   : > { %420 = vmatpush.bf16.msra.mxu0 %v1086_v3  ;;  %580 = vmatpush.bf16.xpose.msra.mxu2 %v1042_v9  ;;  %v1033_v21 = vld [vmem:[%s1666_s1 + $0xd0] sm:$0xf]  ;;  %v1101_v22 = vld [vmem:[%s1666_s1 + $0xd4] sm:$0xf0]  ;;  %v1002_v24 = vor.u32 %v1093_v20, %v1001_v19  ;;  %v1081_v26 = vld [vmem:[%s1667_s2 + $0x8] sm:$0xff]  ;;  %v468_v3 = vand.u32 127, %v467_v2  ;;  %p1200_p2 = pneg %p1199_p1 }
  0x28   : > { %v1082_v23 = vld [vmem:[%s1667_s2 + $0x10] sm:$0xff]  ;;  %v1034_v25 = vor.u32 %v1101_v22, %v1033_v21  ;;  %v997_v27 = vld [vmem:[%s1666_s1 + $0x40] sm:$0xf]  ;;  %v1092_v28 = vld [vmem:[%s1666_s1 + $0x44] sm:$0xf0] }
  0x29   : > { %v1029_v29 = vld [vmem:[%s1666_s1 + $0xc0] sm:$0xf]  ;;  %v1100_v30 = vld [vmem:[%s1666_s1 + $0xc4] sm:$0xf0]  ;;  %v998_v32 = vor.u32 %v1092_v28, %v997_v27  ;;  %v993_v35 = vld [vmem:[%s1666_s1 + $0x30] sm:$0xf]  ;;  %p1205_p7 = pnand %p1204_p6, %p1200_p2 }
  0x2a   : > { %v1080_v31 = vld [vmem:[%s1667_s2] sm:$0xff]  ;;  %v1030_v33 = vor.u32 %v1100_v30, %v1029_v29  ;;  %v1091_v36 = vld [vmem:[%s1666_s1 + $0x34] sm:$0xf0]  ;;  %v1025_v37 = vld [vmem:[%s1666_s1 + $0xb0] sm:$0xf]  ;;  %vm469_vm0 = vcmp.lt.s32.totalorder %v468_v3, 8 }
  0x2b   : > { %421 = vmatpush.bf16.msra.mxu0 %v1085_v10  ;;  %v1079_v34 = vld [vmem:[%s301_s13] sm:$0xff]  ;;  %v1099_v38 = vld [vmem:[%s1666_s1 + $0xb4] sm:$0xf0]  ;;  %v994_v39 = vor.u32 %v1091_v36, %v993_v35  ;;  %v985_v47 = vld [vmem:[%s1666_s1 + $0x10] sm:$0xf] }
  0x2c   : > { %v1026_v40 = vor.u32 %v1099_v38, %v1025_v37  ;;  %v989_v41 = vld [vmem:[%s1666_s1 + $0x20] sm:$0xf]  ;;  %v1090_v42 = vld [vmem:[%s1666_s1 + $0x24] sm:$0xf0]  ;;  %v1089_v48 = vld [vmem:[%s1666_s1 + $0x14] sm:$0xf0] }
  0x2d   : > { %v1021_v43 = vld [vmem:[%s1666_s1 + $0xa0] sm:$0xf]  ;;  %v1098_v44 = vld [vmem:[%s1666_s1 + $0xa4] sm:$0xf0]  ;;  %v990_v45 = vor.u32 %v1090_v42, %v989_v41  ;;  %v1017_v49 = vld [vmem:[%s1666_s1 + $0x90] sm:$0xf]  ;;  %v986_v51 = vor.u32 %v1089_v48, %v985_v47 }
  0x2e   : > { %520 = vmatpush.bf16.xpose.msra.mxu1 %v1006_v16  ;;  %v1022_v46 = vor.u32 %v1098_v44, %v1021_v43  ;;  %v1097_v50 = vld [vmem:[%s1666_s1 + $0x94] sm:$0xf0]  ;;  %v981_v53 = vld [vmem:[%s1666_s1] sm:$0xf]  ;;  %v1088_v54 = vld [vmem:[%s1666_s1 + $0x4] sm:$0xf0] }
  0x2f   : > { %422 = vmatpush.bf16.msra.mxu0 %v1084_v15  ;;  %581 = vmatpush.bf16.xpose.msra.mxu2 %v1038_v17  ;;  %v1018_v52 = vor.u32 %v1097_v50, %v1017_v49  ;;  %v982_v55 = vor.u32 %v1088_v54, %v981_v53  ;;  %v1013_v56 = vld [vmem:[%s1666_s1 + $0x80] sm:$0xf]  ;;  %v1096_v57 = vld [vmem:[%s1666_s1 + $0x84] sm:$0xf0]  ;;  %v1261_v4 = vmov -1e+30  }
  0x30   : > { %v1014_v58 = vor.u32 %v1096_v57, %v1013_v56  ;;  %v1171_v59 = vld [vmem:[%s1668_s3] ss:$0 sm:$0xff]  ;;  %v470_v5 = vsel %vm469_vm0, 0.0, %v1261_v4  ;;  %v449_v12 = vld [vmem:[%s1666_s1 + $0x70] sm:$0xff]  ;;  %v450_v13 = vld [vmem:[%s1666_s1 + $0x78] sm:$0xff] }
  0x31   : > { %v447_v14 = vld [vmem:[%s1666_s1 + $0x60] sm:$0xff]  ;;  %v627_v15 = vrot.slane %v449_v12, 4  ;;  %v628_v16 = vrot.slane %v450_v13, 4  ;;  %v448_v17 = vld [vmem:[%s1666_s1 + $0x68] sm:$0xff]  ;;  %v445_v19 = vld [vmem:[%s1666_s1 + $0x50] sm:$0xff] }
  0x32   : > { %v446_v20 = vld [vmem:[%s1666_s1 + $0x58] sm:$0xff]  ;;  %v626_v21 = vrot.slane %v448_v17, 4  ;;  %v623_v22 = vrot.slane %v445_v19, 4  ;;  %v443_v28 = vld [vmem:[%s1666_s1 + $0x40] sm:$0xff]  ;;  %v444_v29 = vld [vmem:[%s1666_s1 + $0x48] sm:$0xff] }
  0x33   : > { %423 = vmatpush.bf16.msra.mxu0 %v1083_v18  ;;  %v625_v18 = vrot.slane %v447_v14, 4  ;;  %v466_v30 = vld [vmem:[%s1666_s1 + $0xf8] sm:$0xff]  ;;  %v463_v35 = vld [vmem:[%s1666_s1 + $0xe0] sm:$0xff]  ;;  %v464_v36 = vld [vmem:[%s1666_s1 + $0xe8] sm:$0xff]  ;;  %v622_v41 = vrot.slane %v444_v29, 4 }
  0x34   : > { %v639_v38 = vunpack.c.l.b16 %v623_v22  ;;  %v442_v47 = vld [vmem:[%s1666_s1 + $0x38] sm:$0xff]  ;;  %v686_v48 = vrot.slane %v463_v35, 4  ;;  %v687_v49 = vrot.slane %v464_v36, 4  ;;  %v459_v22 = vld [vmem:[%s1666_s1 + $0xc0] sm:$0xff]  ;;  %v436_v29 = vld [vmem:[%s1666_s1 + $0x8] sm:$0xff] }
  0x35   : > { %v641_v27 = vunpack.c.l.b16 %v625_v18  ;;  %v638_v56 = vunpack.c.l.b16 %v622_v41 }
  0x36   : > { %521 = vmatpush.bf16.xpose.msra.mxu1 %v1002_v24  ;;  %v465_v24 = vld [vmem:[%s1666_s1 + $0xf0] sm:$0xff]  ;;  %v702_v54 = vunpack.c.l.b16 %v686_v48  ;;  %v456_v48 = vld [vmem:[%s1666_s1 + $0xa8] sm:$0xff] }
  0x37   : > { %424 = vmatpush.bf16.msra.mxu0 %v1082_v23  ;;  %582 = vmatpush.bf16.xpose.msra.mxu2 %v1034_v25  ;;  %v624_v23 = vrot.slane %v446_v20, 4  ;;  %v643_v25 = vunpack.c.l.b16 %v627_v15  ;;  %v437_v15 = vld [vmem:[%s1666_s1 + $0x10] sm:$0xff] }
  0x38   : > { %v615_v20 = vrot.slane %v437_v15, 4 }
  0x3b   : > { %425 = vmatpush.bf16.msra.mxu0 %v1081_v26  ;;  %v644_v26 = vunpack.c.l.b16 %v628_v16  ;;  %v438_v16 = vld [vmem:[%s1666_s1 + $0x18] sm:$0xff] }
  0x3e   : > { %522 = vmatpush.bf16.xpose.msra.mxu1 %v998_v32  ;;  %v652_v32 = vpack.c.b16 %v644_v26, %v643_v25  ;;  %v631_v25 = vunpack.c.l.b16 %v615_v20  ;;  %v682_v26 = vrot.slane %v459_v22, 4  ;;  %v1104_v20 = vld [vmem:[%s1669_s4] sm:$0xff] }
  0x3f   : > { %426 = vmatpush.bf16.msra.mxu0 %v1080_v31  ;;  %583 = vmatpush.bf16.xpose.msra.mxu2 %v1030_v33  ;;  %v642_v31 = vunpack.c.l.b16 %v626_v21  ;;  %v688_v33 = vrot.slane %v465_v24, 4  ;;  %v616_v21 = vrot.slane %v438_v16, 4 }
  0x40   : > { %661 = vmatpush.bf16.msra.mxu3 %v652_v32  ;;  %v698_v36 = vunpack.c.l.b16 %v682_v26 }
  0x41   : > { %v651_v43 = vpack.c.b16 %v642_v31, %v641_v27  ;;  %v704_v44 = vunpack.c.l.b16 %v688_v33  ;;  %v632_v31 = vunpack.c.l.b16 %v616_v21  ;;  %v614_v33 = vrot.slane %v436_v29, 4 }
  0x42   : > { %427 = vmatmul.bf16.vlgmr.msra.gmra.mxu0 %v1079_v34  ;;  %v689_v34 = vrot.slane %v466_v30, 4  ;;  %v457_v30 = vld [vmem:[%s1666_s1 + $0xb0] sm:$0xff] }
  0x43   : > { %v680_v35 = vrot.slane %v457_v30, 4  ;;  %v630_v41 = vunpack.c.l.b16 %v614_v33 }
  0x44   : > { %662 = vmatpush.bf16.msra.mxu3 %v651_v43 }
  0x46   : > { %523 = vmatpush.bf16.xpose.msra.mxu1 %v994_v39  ;;  %v640_v39 = vunpack.c.l.b16 %v624_v23  ;;  %v460_v23 = vld [vmem:[%s1666_s1 + $0xc8] sm:$0xff] }
  0x47   : > { %584 = vmatpush.bf16.xpose.msra.mxu2 %v1026_v40  ;;  %v621_v40 = vrot.slane %v443_v28, 4  ;;  %v683_v27 = vrot.slane %v460_v23, 4  ;;  %v435_v28 = vld [vmem:[%s1666_s1] sm:$0xff] }
  0x48   : > { %v613_v32 = vrot.slane %v435_v28, 4 }
  0x49   : > { %v637_v53 = vunpack.c.l.b16 %v621_v40 }
  0x4a   : > { %v629_v40 = vunpack.c.l.b16 %v613_v32 }
  0x4e   : > { %524 = vmatpush.bf16.xpose.msra.mxu1 %v990_v45  ;;  %v705_v45 = vunpack.c.l.b16 %v689_v34  ;;  %v458_v34 = vld [vmem:[%s1666_s1 + $0xb8] sm:$0xff] }
  0x4f   : > { %585 = vmatpush.bf16.xpose.msra.mxu2 %v1022_v46  ;;  %v441_v46 = vld [vmem:[%s1666_s1 + $0x30] sm:$0xff] }
  0x50   : > { %v619_v57 = vrot.slane %v441_v46, 4 }
  0x56   : > { %525 = vmatpush.bf16.xpose.msra.mxu1 %v986_v51  ;;  %v713_v51 = vpack.c.b16 %v705_v45, %v704_v44  ;;  %v645_v45 = vpack.c.b16 %v630_v41, %v629_v40 }
  0x57   : > { %586 = vmatpush.bf16.xpose.msra.mxu2 %v1018_v52  ;;  %v650_v52 = vpack.c.b16 %v640_v39, %v639_v38  ;;  %v681_v38 = vrot.slane %v458_v34, 4  ;;  %v646_v39 = vpack.c.b16 %v632_v31, %v631_v25  ;;  %v1172_v25 = vld [vmem:[%s1670_s5] ss:$0 sm:$0xff] }
  0x58   : > { %722 = vmatpush.bf16.msrb.mxu0 %v713_v51 }
  0x59   : > { %663 = vmatpush.bf16.msra.mxu3 %v650_v52  ;;  %v697_v44 = vunpack.c.l.b16 %v681_v38 }
  0x5e   : > { %526 = vmatpush.bf16.xpose.msra.mxu1 %v982_v55  ;;  %v703_v55 = vunpack.c.l.b16 %v687_v49 }
  0x5f   : > { %587 = vmatpush.bf16.xpose.msra.mxu2 %v1014_v58  ;;  %v620_v58 = vrot.slane %v442_v47, 4  ;;  %v455_v47 = vld [vmem:[%s1666_s1 + $0xa0] sm:$0xff] }
  0x60   : > { %v678_v49 = vrot.slane %v455_v47, 4 }
  0x62   : > { %v694_v51 = vunpack.c.l.b16 %v678_v49 }
  0xbf   : > { %v428_v60 = vpop.f32.mrf.mxu0 }
  0xc0   : > { %v429_v61 = vadd.f32 %v1171_v59, %v428_v60  ;;  %v649_v60 = vpack.c.b16 %v638_v56, %v637_v53  ;;  %v453_v53 = vld [vmem:[%s1666_s1 + $0x90] sm:$0xff] }
  0xc1   : > { %v676_v56 = vrot.slane %v453_v53, 4 }
  0xc2   : > { %v433_v62 = vpack.c.bf16 %v429_v61, %v429_v61  ;;  %v635_v61 = vunpack.c.l.b16 %v619_v57  ;;  %664 = vmatpush.bf16.msra.mxu3 %v649_v60  ;;  %v451_v60 = vld [vmem:[%s1666_s1 + $0x80] sm:$0xff] }
  0xc4   : > { %527 = vmatmul.bf16.vlgmr.msra.gmra.mxu1 %v433_v62  ;;  %v636_v62 = vunpack.c.l.b16 %v620_v58  ;;  %v692_v58 = vunpack.c.l.b16 %v676_v56 }
  0xc7   : > { %v430_v63 = vpop.f32.mrf.mxu0 }
  0xc8   : > { %v431_v0 = vadd.f32 %v1171_v59, %v430_v63  ;;  %v712_v59 = vpack.c.b16 %v703_v55, %v702_v54  ;;  %v454_v54 = vld [vmem:[%s1666_s1 + $0x98] sm:$0xff] }
  0xc9   : > { %v677_v57 = vrot.slane %v454_v54, 4 }
  0xca   : > { %v434_v1 = vpack.c.bf16 %v431_v0, %v431_v0  ;;  %723 = vmatpush.bf16.msrb.mxu0 %v712_v59  ;;  %v648_v0 = vpack.c.b16 %v636_v62, %v635_v61  ;;  %v452_v61 = vld [vmem:[%s1666_s1 + $0x88] sm:$0xff]  ;;  %v674_v62 = vrot.slane %v451_v60, 4 }
  0xcb   : > { %v693_v59 = vunpack.c.l.b16 %v677_v57 }
  0xcc   : > { %588 = vmatmul.bf16.vlgmr.msra.gmra.mxu2 %v434_v1  ;;  %665 = vmatpush.bf16.msra.mxu3 %v648_v0  ;;  %v675_v0 = vrot.slane %v452_v61, 4 }
 0x141   : > { %v528_v6 = vpop.f32.mrf.mxu1 }
 0x142   : > { %v529_v7 = vadd.f32 %v528_v6, %v470_v5  ;;  %v440_v6 = vld [vmem:[%s1666_s1 + $0x28] sm:$0xff] }
 0x144   : > { %593 = vmax.xlane.f32.xlu0 %v529_v7 }
 0x149   : > { %v530_v8 = vpop.f32.mrf.mxu1 }
 0x14a   : > { %v618_v8 = vrot.slane %v440_v6, 4  ;;  %v1111_v6 = vld [vmem:[%s1669_s4 + $0x38] sm:$0xff] }
 0x14c   : > { %v634_v12 = vunpack.c.l.b16 %v618_v8 }
 0x14f   : > { %v589_v9 = vpop.f32.mrf.mxu2 }
 0x150   : > { %v1491_v10 = vadd.f32 %v589_v9, %v470_v5  ;;  %v439_v5 = vld [vmem:[%s1666_s1 + $0x20] sm:$0xff]  ;;  %v461_v9 = vld [vmem:[%s1666_s1 + $0xd0] sm:$0xff] }
 0x151   : > { %v684_v13 = vrot.slane %v461_v9, 4  ;;  %v1109_v9 = vld [vmem:[%s1669_s4 + $0x28] sm:$0xff] }
 0x152   : > { %595 = vmax.xlane.f32.xlu0 %v1491_v10 }
 0x153   : > { %v700_v18 = vunpack.c.l.b16 %v684_v13  ;;  %v1107_v13 = vld [vmem:[%s1669_s4 + $0x18] sm:$0xff] }
 0x157   : > { %v591_v11 = vpop.f32.mrf.mxu2 }
 0x1b7   : > { %v594_v37 = vpop.xlane.xlu0 %593 }
 0x1b8   : > { %v597_v42 = vsub.f32 %v529_v7, %v594_v37  ;;  %v617_v7 = vrot.slane %v439_v5, 4  ;;  %v699_v37 = vunpack.c.l.b16 %v683_v27 }
 0x1ba   : > { %v599_v50 = vmul.f32 1.442695, %v597_v42  ;;  %v633_v11 = vunpack.c.l.b16 %v617_v7  ;;  %v696_v42 = vunpack.c.l.b16 %v680_v35  ;;  %v710_v43 = vpack.c.b16 %v699_v37, %v698_v36  ;;  %v1110_v7 = vld [vmem:[%s1669_s4 + $0x30] sm:$0xff] }
 0x1bc   : > { %1173 = vpow2.f32 %v599_v50  ;;  %v647_v17 = vpack.c.b16 %v634_v12, %v633_v11  ;;  %v709_v46 = vpack.c.b16 %v697_v44, %v696_v42  ;;  %v679_v50 = vrot.slane %v456_v48, 4 }
 0x1be   : > { %666 = vmatpush.bf16.msra.mxu3 %v647_v17  ;;  %v695_v52 = vunpack.c.l.b16 %v679_v50 }
 0x1c0   : > { %v708_v55 = vpack.c.b16 %v695_v52, %v694_v51 }
 0x1c2   : > { %v1536_v63 = vpop.eup %1173  ;;  %667 = vmatpush.bf16.msra.mxu3 %v646_v39 }
 0x1c3   : > { %603 = vadd.xlane.f32.xlu1 %v1536_v63 }
 0x1c5   : > { %v596_v1 = vpop.xlane.xlu0 %595 }
 0x1c6   : > { %v598_v2 = vsub.f32 %v1491_v10, %v596_v1  ;;  %v462_v10 = vld [vmem:[%s1666_s1 + $0xd8] sm:$0xff]  ;;  %668 = vmatpush.bf16.msra.mxu3 %v645_v45  ;;  %v707_v1 = vpack.c.b16 %v693_v59, %v692_v58 }
 0x1c7   : > { %v685_v14 = vrot.slane %v462_v10, 4  ;;  %v1108_v10 = vld [vmem:[%s1669_s4 + $0x20] sm:$0xff] }
 0x1c8   : > { %v601_v3 = vmul.f32 1.442695, %v598_v2  ;;  %v690_v2 = vunpack.c.l.b16 %v674_v62 }
 0x1c9   : > { %v701_v19 = vunpack.c.l.b16 %v685_v14 }
 0x1ca   : > { %1175 = vpow2.f32 %v601_v3  ;;  %v691_v3 = vunpack.c.l.b16 %v675_v0  ;;  %804 = vmatpush.bf16.msrb.mxu3 %v1111_v6 }
 0x1cb   : > { %v711_v24 = vpack.c.b16 %v701_v19, %v700_v18  ;;  %v1105_v19 = vld [vmem:[%s1669_s4 + $0x8] sm:$0xff] }
 0x1cc   : > { %v706_v5 = vpack.c.b16 %v691_v3, %v690_v2 }
 0x1cd   : > { %724 = vmatpush.bf16.msrb.mxu0 %v711_v24 }
 0x1ce   : > { %805 = vmatpush.bf16.msrb.mxu3 %v1110_v7 }
 0x1d0   : > { %v1540_v4 = vpop.eup %1175 }
 0x1d1   : > { %605 = vadd.xlane.f32.xlu1 %v1540_v4  ;;  %725 = vmatpush.bf16.msrb.mxu0 %v710_v43 }
 0x1d2   : > { %806 = vmatpush.bf16.msrb.mxu3 %v1109_v9 }
 0x1d5   : > { %726 = vmatpush.bf16.msrb.mxu0 %v709_v46 }
 0x1d6   : > { %807 = vmatpush.bf16.msrb.mxu3 %v1108_v10 }
 0x1d9   : > { %727 = vmatpush.bf16.msrb.mxu0 %v708_v55 }
 0x1da   : > { %808 = vmatpush.bf16.msrb.mxu3 %v1107_v13 }
 0x1dd   : > { %728 = vmatpush.bf16.msrb.mxu0 %v707_v1 }
 0x1e1   : > { %729 = vmatpush.bf16.msrb.mxu0 %v706_v5 }
 0x236   : > { %v604_v8 = vpop.xlane.xlu1 %603 }
 0x237   : > { %1177 = vrcp.f32 %v604_v8 }
 0x23d   : > { %v1178_v11 = vpop.eup %1177 }
 0x23e   : > { %v609_v12 = vmul.f32 %v1178_v11, %v1536_v63  ;;  %v1106_v63 = vld [vmem:[%s1669_s4 + $0x10] sm:$0xff] }
 0x23f   : > { %809 = vmatpush.bf16.msrb.mxu3 %v1106_v63 }
 0x240   : > { %v611_v14 = vpack.c.bf16 %v609_v12, %v609_v12 }
 0x242   : > { %669 = vmatmul.bf16.vlgmr.msra.gmra.mxu3 %v611_v14 }
 0x243   : > { %810 = vmatpush.bf16.msrb.mxu3 %v1105_v19 }
 0x244   : > { %v606_v15 = vpop.xlane.xlu1 %605 }
 0x245   : > { %1179 = vrcp.f32 %v606_v15 }
 0x247   : > { %811 = vmatpush.bf16.msrb.mxu3 %v1104_v20 }
 0x24b   : > { %v1180_v16 = vpop.eup %1179 }
 0x24c   : > { %v610_v17 = vmul.f32 %v1180_v16, %v1540_v4 }
 0x24e   : > { %v612_v18 = vpack.c.bf16 %v610_v17, %v610_v17 }
 0x250   : > { %730 = vmatmul.bf16.vlgmr.msrb.gmra.mxu0 %v612_v18 }
 0x2c5   : > { %v670_v21 = vpop.f32.mrf.mxu3 }
 0x2cd   : > { %v672_v4 = vpop.f32.mrf.mxu3  ;;  %v731_v22 = vpop.f32.mrf.mxu0 }
 0x2ce   : > { %v751_v23 = vpack.c.bf16 %v731_v22, %v670_v21 }
 0x2d0   : > { %812 = vmatmul.bf16.vlgmr.msrb.gmra.mxu3 %v751_v23 }
 0x2d5   : > { %v733_v24 = vpop.f32.mrf.mxu0 }
 0x353   : > { %v813_v26 = vpop.f32.mrf.mxu3 }
 0x354   : > { %v814_v27 = vadd.f32 %v1172_v25, %v813_v26 }
 0x356   : > { %818 = vst [vmem:[%s333_s19] sm:$0xff] %v814_v27 }
 0x35b   : > { %v815_v28 = vpop.f32.mrf.mxu3 }
 0x35c   : > { %v816_v29 = vadd.f32 %v1172_v25, %v815_v28 }
 0x35e   : > { %819 = vst [vmem:[%s333_s19 + $0x8] sm:$0xff] %v816_v29 }
 0x35f   : > { %1208 = shalt.err (!%p1205_p7)
}
 0x360   : > { %s1262_s12 = smov 128   ;;  %s1263_s16 = smov 256  }
 0x361   : > { %s1264_s17 = smov 8  }
 0x362   : > { %1112 = dma.vmem_to_hbm [thread:$0]  (%p1339_p5), %s836_s20, 256, %s838_s27, %s821_s28, %s1262_s12, %s1263_s16, %s1264_s17  }
 0x363 PF: > { %s852_s18 = sand.u32 1, %s1239_s21   ;;  %p1115_p8 = pnand %p937_p10, %p1350_p9 }
 0x364   : > { %s853_s19 = scalar_lea.sflag [#allocation4], %s852_s18 }
 0x365   : > { %p1116_p11 = pneg %p1115_p8 }
 0x367   : > { %1234 = dma.done.wait (%p1116_p11), %s853_s19, 256  }
 0x368   : > { %1236 = vsyncadd (%p1116_p11), %s853_s19, 4294967040  ;;  %s19_s26 = sadd.s32 1, %s1259_s26   ;;  %s1674_s21 = smov %s1243_s22 }
 0x369   : > { %p16_p12 = scmp.ge.s32.totalorder %s19_s26, 4   ;;  %s1675_s22 = smov %s1247_s23 }
 0x36a   : > { %s1676_s23 = smov %s1348_s9  ;;  %s1677_s24 = smov %s1255_s25 }
 0x36b   : > { %s1678_s25 = smov %s1680_s29  ;;  %18 = sbr.rel (!%p16_p12) target bundleno = 4 (0x4), region = 128 }
 0x370   :  { %859 = vsyncpa [#allocation4], 1 }
 0x371   :  { %861 = vsyncpa [#allocation4 + $0x1], 1 }

</bundles_post_ra>
